<compile_context>
chip_gen: v7x
topology: tpu7x:2x2x1
jax: 0.10.0
libtpu: 0.0.40
codegen_flags: <defaults>
</compile_context>

<pallas_src>
import functools

import jax
import jax.numpy as jnp
from jax import lax
from jax.experimental import pallas as pl
from jax.experimental.pallas import tpu as pltpu

_LANE = 128
_SUBLANE = 8


def _round_up(v, m):
    return ((v + m - 1) // m) * m


def _target_block_bytes():
    """Per-input VMEM block-size target, generation dependent."""
    try:
        vmem = pltpu.get_tpu_info().vmem_capacity_bytes
    except Exception:
        return 4 * 1024 * 1024
    return 8 * 1024 * 1024 if vmem >= 128 * 1024 * 1024 else 4 * 1024 * 1024


def _pick_r(n, d):
    """Sub-rows per sample.  Must divide d so the reshape stays a free view.

    Prefer rows = n*r that (a) is a multiple of 8 and >= 16 (two 8-row blocks
    -> both v7x TensorCores), then (b) a multiple of 8, then (c) >= 8; among
    equals prefer the smallest split.  Falls back to r = 1."""
    if n >= 2 * _SUBLANE:
        return 1
    best_r, best_score = 1, None
    for r in range(1, min(d, 64) + 1):
        if d % r:
            continue
        rows = n * r
        score = (
            1 if (rows % _SUBLANE == 0 and rows >= 2 * _SUBLANE) else 0,
            1 if (rows % _SUBLANE == 0 and rows >= _SUBLANE) else 0,
            1 if rows >= _SUBLANE else 0,
            -r,
        )
        if best_score is None or score > best_score:
            best_r, best_score = r, score
    return best_r


def _choose_tiles(rows, d_inner, bpe, target_bytes):
    """Pick (tile_rows, tile_d, d_blocks, need_lane_mask)."""
    base_rows = _SUBLANE if rows % _SUBLANE == 0 else rows
    lane_cap = max(_LANE, (target_bytes // (base_rows * bpe)) // _LANE * _LANE)

    if d_inner <= lane_cap:
        # Single d block covering the full extent: exact, no lane mask needed.
        tile_d, d_blocks, need_mask = d_inner, 1, False
    else:
        # Balanced, lane-aligned tiles -> pad waste < 128 lanes per block.
        d_blocks = -(-d_inner // lane_cap)
        tile_d = _round_up(-(-d_inner // d_blocks), _LANE)
        d_blocks = -(-d_inner // tile_d)
        need_mask = (d_inner % tile_d) != 0

    if rows % _SUBLANE != 0:
        tile_rows = rows                       # single full-extent row block
    else:
        # Grow row tile toward the block-byte target (small-D / large-N case),
        # but keep >= 2 row blocks when possible so v7x uses both TCs, and
        # keep tile_rows a divisor of rows (no ragged row blocks).
        row_budget = max(_SUBLANE,
                         (target_bytes // (tile_d * bpe)) // _SUBLANE * _SUBLANE)
        upper = min(rows, row_budget)
        if rows >= 2 * _SUBLANE:
            upper = min(upper, rows // 2)
        upper = max(_SUBLANE, (upper // _SUBLANE) * _SUBLANE)
        tile_rows = _SUBLANE
        cand = upper
        while cand >= _SUBLANE:
            if rows % cand == 0:
                tile_rows = cand
                break
            cand -= _SUBLANE
    return tile_rows, tile_d, d_blocks, need_mask


def _make_dice_kernel(tile_d, d_inner, need_mask):
    """Accumulate per-row sum(x*t) and sum(x)+sum(t) over the d grid axis."""

    def kernel(x_ref, t_ref, inter_ref, sxt_ref):
        k = pl.program_id(1)

        @pl.when(k == 0)
        def _init():
            inter_ref[...] = jnp.zeros_like(inter_ref)
            sxt_ref[...] = jnp.zeros_like(sxt_ref)

        x = x_ref[...].astype(jnp.float32)     # (tile_rows, tile_d)
        t = t_ref[...].astype(jnp.float32)
        xt = x * t
        s = x + t                              # sum(x)+sum(t) == sum(x+t)
        if need_mask:
            # Last d-block is ragged: Pallas edge-block padding is
            # unspecified, so mask invalid lanes before reducing.
            lane = lax.broadcasted_iota(jnp.int32, x.shape, 1)
            valid = (k * tile_d + lane) < d_inner
            xt = jnp.where(valid, xt, 0.0)
            s = jnp.where(valid, s, 0.0)
        inter_ref[...] += jnp.sum(xt, axis=1, keepdims=True)
        sxt_ref[...] += jnp.sum(s, axis=1, keepdims=True)

    return kernel


def _binary_dice_loss_impl(inputs, targets, target_bytes):
    n = targets.shape[0]
    x2d = inputs.reshape(n, -1)                # keep original dtype
    t2d = targets.reshape(n, -1)
    d = x2d.shape[1]

    # Fill sublanes (and enable >=2 row blocks) by splitting each sample into
    # r contiguous sub-rows; r divides d so the reshape is a free view.
    r = _pick_r(n, d)
    rows, d_inner = n * r, d // r
    x_rows = x2d.reshape(rows, d_inner)
    t_rows = t2d.reshape(rows, d_inner)

    x_bpe = jnp.dtype(x_rows.dtype).itemsize
    t_bpe = jnp.dtype(t_rows.dtype).itemsize
    tile_rows, tile_d, d_blocks, need_mask = _choose_tiles(
        rows, d_inner, max(x_bpe, t_bpe), target_bytes)

    grid = (rows // tile_rows, d_blocks)

    # VMEM budget from actual usage: 2 inputs x 2 pipeline buffers x block,
    # plus the two tiny resident output blocks, plus headroom for Mosaic.
    padded_block = _round_up(tile_rows, _SUBLANE) * _round_up(tile_d, _LANE)
    out_bytes = 2 * 2 * _round_up(tile_rows, _SUBLANE) * _LANE * 4
    vmem_need = 2 * padded_block * (x_bpe + t_bpe) + out_bytes
    vmem_limit = max(8 << 20, int(_round_up(vmem_need, 1 << 20)) + (4 << 20))

    inter, sxt = pl.pallas_call(
        _make_dice_kernel(tile_d, d_inner, need_mask),
        out_shape=(
            jax.ShapeDtypeStruct((rows, 1), jnp.float32),
            jax.ShapeDtypeStruct((rows, 1), jnp.float32),
        ),
        grid_spec=pltpu.PrefetchScalarGridSpec(
            num_scalar_prefetch=0,
            grid=grid,
            in_specs=[
                pl.BlockSpec((tile_rows, tile_d), lambda i, k: (i, k)),
                pl.BlockSpec((tile_rows, tile_d), lambda i, k: (i, k)),
            ],
            out_specs=[
                pl.BlockSpec((tile_rows, 1), lambda i, k: (i, 0)),
                pl.BlockSpec((tile_rows, 1), lambda i, k: (i, 0)),
            ],
        ),
        compiler_params=pltpu.CompilerParams(
            dimension_semantics=("parallel", "arbitrary"),
            vmem_limit_bytes=vmem_limit,
        ),
    )(x_rows, t_rows)

    # Tiny JAX epilogue: combine each sample's r sub-rows, then 1 - mean(dice).
    smooth = jnp.float32(1.0)
    inter_n = jnp.sum(inter.reshape(n, r), axis=1)
    sxt_n = jnp.sum(sxt.reshape(n, r), axis=1)
    dice = (2.0 * inter_n + smooth) / (sxt_n + smooth)
    return jnp.float32(1.0) - jnp.sum(dice) / jnp.float32(n)


@jax.jit
def binary_dice_loss(inputs, targets):
    """Pallas implementation of BinaryDiceLoss.forward (scalar f32 loss)."""
    return _binary_dice_loss_impl(inputs, targets, _target_block_bytes())


# Internal: same kernel with a forced per-input block-byte target (used by the
# self-test to exercise the multi-block reduction + ragged-lane-mask path at
# small shapes).
@functools.partial(jax.jit, static_argnames=("target_bytes",))
def _binary_dice_loss_small_blocks(inputs, targets, target_bytes):
    return _binary_dice_loss_impl(inputs, targets, target_bytes)


def _reference_dice_loss(inputs, targets):
    n = targets.shape[0]
    smooth = 1.0
    x = inputs.reshape(n, -1).astype(jnp.float32)
    t = targets.reshape(n, -1).astype(jnp.float32)
    inter = jnp.sum(x * t, axis=1)
    dice = (2.0 * inter + smooth) / (jnp.sum(x, axis=1) + jnp.sum(t, axis=1) + smooth)
    return 1.0 - jnp.sum(dice) / n


if __name__ == "__main__":
    key = jax.random.PRNGKey(0)
    kx, kt = jax.random.split(key)

    # Test 1: shapes implied by the module (NCHW probabilities vs binary mask).
    N, C, H, W = 2, 4, 16, 16
    x = jax.nn.sigmoid(jax.random.normal(kx, (N, C, H, W), dtype=jnp.float32))
    t = (jax.random.uniform(kt, (N, C, H, W)) > 0.5).astype(jnp.float32)
    loss = jax.block_until_ready(binary_dice_loss(x, t))
    ref = jax.block_until_ready(_reference_dice_loss(x, t))
    if not jnp.allclose(loss, ref, atol=1e-5, rtol=1e-5):
        raise AssertionError(f"mismatch: pallas={loss} ref={ref}")

    # Test 2: awkward shape (rows not a multiple of 8, non-lane-aligned D).
    kx2, kt2 = jax.random.split(kt)
    N2, C2, H2, W2 = 3, 3, 7, 5
    x2 = jax.nn.sigmoid(jax.random.normal(kx2, (N2, C2, H2, W2), dtype=jnp.float32))
    t2 = (jax.random.uniform(kt2, (N2, C2, H2, W2)) > 0.5).astype(jnp.float32)
    loss2 = jax.block_until_ready(binary_dice_loss(x2, t2))
    ref2 = jax.block_until_ready(_reference_dice_loss(x2, t2))
    if not jnp.allclose(loss2, ref2, atol=1e-5, rtol=1e-5):
        raise AssertionError(f"mismatch (odd shape): pallas={loss2} ref={ref2}")

    # Test 3: force tiny blocks so the multi-block reduction axis, the row-
    # parallel axis, and the in-kernel ragged-lane mask path all execute.
    kx3, kt3 = jax.random.split(kt2)
    N3, D3 = 16, 200  # d_inner=200 -> 2 d-blocks of 128 with a ragged tail
    x3 = jax.nn.sigmoid(jax.random.normal(kx3, (N3, D3), dtype=jnp.float32))
    t3 = (jax.random.uniform(kt3, (N3, D3)) > 0.5).astype(jnp.float32)
    loss3 = jax.block_until_ready(_binary_dice_loss_small_blocks(x3, t3, 4096))
    ref3 = jax.block_until_ready(_reference_dice_loss(x3, t3))
    if not jnp.allclose(loss3, ref3, atol=1e-5, rtol=1e-5):
        raise AssertionError(f"mismatch (masked path): pallas={loss3} ref={ref3}")

    print("KERNEL_OK")
</pallas_src>

<mosaic_0001>
module attributes {stable_mosaic.version = 11 : i64} {
  func.func @kernel(%arg0: i32, %arg1: i32, %arg2: memref<8x128xf32, #tpu.memory_space<vmem>>, %arg3: memref<8x128xf32, #tpu.memory_space<vmem>>, %arg4: memref<8x1xf32, #tpu.memory_space<vmem>>, %arg5: memref<8x1xf32, #tpu.memory_space<vmem>>) attributes {dimension_semantics = [#tpu.dimension_semantics<parallel>, #tpu.dimension_semantics<arbitrary>], iteration_bounds = array<i64: 2, 1>, scalar_prefetch = 0 : i64, scratch_operands = 0 : i64, tpu.core_type = #tpu.core_type<tc>, window_params = [{transform_indices = @transform_0, window_bounds = array<i64: 8, 128>}, {transform_indices = @transform_1, window_bounds = array<i64: 8, 128>}, {transform_indices = @transform_2, window_bounds = array<i64: 8, 1>}, {transform_indices = @transform_3, window_bounds = array<i64: 8, 1>}]} {
    %c0_i32 = arith.constant 0 : i32
    %0 = arith.cmpi eq, %arg1, %c0_i32 : i32
    %1 = arith.extui %0 : i1 to i32
    %c0_i32_0 = arith.constant 0 : i32
    %2 = arith.cmpi ne, %1, %c0_i32_0 : i32
    scf.if %2 {
      %cst_13 = arith.constant 0.000000e+00 : f32
      %17 = vector.broadcast %cst_13 : f32 to vector<8x1xf32>
      %c0_14 = arith.constant 0 : index
      %c0_15 = arith.constant 0 : index
      %18 = vector.load %arg4[%c0_14, %c0_15] : memref<8x1xf32, #tpu.memory_space<vmem>>, vector<8x1xf32>
      tpu.vector_store %arg4[%c0_14, %c0_15], %17 {strides = array<i32>} : memref<8x1xf32, #tpu.memory_space<vmem>>, vector<8x1xf32>,
      %cst_16 = arith.constant 0.000000e+00 : f32
      %19 = vector.broadcast %cst_16 : f32 to vector<8x1xf32>
      %c0_17 = arith.constant 0 : index
      %c0_18 = arith.constant 0 : index
      %20 = vector.load %arg5[%c0_17, %c0_18] : memref<8x1xf32, #tpu.memory_space<vmem>>, vector<8x1xf32>
      tpu.vector_store %arg5[%c0_17, %c0_18], %19 {strides = array<i32>} : memref<8x1xf32, #tpu.memory_space<vmem>>, vector<8x1xf32>,
    } else {
    }
    %c0 = arith.constant 0 : index
    %c0_1 = arith.constant 0 : index
    %3 = vector.load %arg2[%c0, %c0_1] : memref<8x128xf32, #tpu.memory_space<vmem>>, vector<8x128xf32>
    %c0_2 = arith.constant 0 : index
    %c0_3 = arith.constant 0 : index
    %4 = vector.load %arg3[%c0_2, %c0_3] : memref<8x128xf32, #tpu.memory_space<vmem>>, vector<8x128xf32>
    %5 = arith.mulf %3, %4 : vector<8x128xf32>
    %6 = arith.addf %3, %4 : vector<8x128xf32>
    %c0_4 = arith.constant 0 : index
    %c0_5 = arith.constant 0 : index
    %7 = vector.load %arg4[%c0_4, %c0_5] : memref<8x1xf32, #tpu.memory_space<vmem>>, vector<8x1xf32>
    %cst = arith.constant dense<0.000000e+00> : vector<8xf32>
    %8 = vector.multi_reduction <add>, %5, %cst [1] : vector<8x128xf32> to vector<8xf32>
    %9 = vector.shape_cast %8 : vector<8xf32> to vector<8x1xf32>
    %10 = arith.addf %7, %9 : vector<8x1xf32>
    %c0_6 = arith.constant 0 : index
    %c0_7 = arith.constant 0 : index
    %11 = vector.load %arg4[%c0_6, %c0_7] : memref<8x1xf32, #tpu.memory_space<vmem>>, vector<8x1xf32>
    tpu.vector_store %arg4[%c0_6, %c0_7], %10 {strides = array<i32>} : memref<8x1xf32, #tpu.memory_space<vmem>>, vector<8x1xf32>,
    %c0_8 = arith.constant 0 : index
    %c0_9 = arith.constant 0 : index
    %12 = vector.load %arg5[%c0_8, %c0_9] : memref<8x1xf32, #tpu.memory_space<vmem>>, vector<8x1xf32>
    %cst_10 = arith.constant dense<0.000000e+00> : vector<8xf32>
    %13 = vector.multi_reduction <add>, %6, %cst_10 [1] : vector<8x128xf32> to vector<8xf32>
    %14 = vector.shape_cast %13 : vector<8xf32> to vector<8x1xf32>
    %15 = arith.addf %12, %14 : vector<8x1xf32>
    %c0_11 = arith.constant 0 : index
    %c0_12 = arith.constant 0 : index
    %16 = vector.load %arg5[%c0_11, %c0_12] : memref<8x1xf32, #tpu.memory_space<vmem>>, vector<8x1xf32>
    tpu.vector_store %arg5[%c0_11, %c0_12], %15 {strides = array<i32>} : memref<8x1xf32, #tpu.memory_space<vmem>>, vector<8x1xf32>,
    return
  }
  func.func @transform_0(%arg0: i32, %arg1: i32) -> (i32, i32) {
    %c0_i32 = arith.constant 0 : i32
    return %arg0, %arg1 : i32, i32
  }
  func.func @transform_1(%arg0: i32, %arg1: i32) -> (i32, i32) {
    %c0_i32 = arith.constant 0 : i32
    return %arg0, %arg1 : i32, i32
  }
  func.func @transform_2(%arg0: i32, %arg1: i32) -> (i32, i32) {
    %c0_i32 = arith.constant 0 : i32
    %c0_i32_0 = arith.constant 0 : i32
    return %arg0, %c0_i32 : i32, i32
  }
  func.func @transform_3(%arg0: i32, %arg1: i32) -> (i32, i32) {
    %c0_i32 = arith.constant 0 : i32
    %c0_i32_0 = arith.constant 0 : i32
    return %arg0, %c0_i32 : i32, i32
  }
}

</mosaic_0001>

<bundles_post_ra>
// kernel: binary_dice_loss.1
= control target key start
LH: loop header
LB: loop body
LE: loop exit
PB: predicated region body
PF: predicated region fallthrough
CT: control target
= control target key end

     0   :  { %s441_s12 = smov 0   ;;  %s443_s13 = smov 0   ;;  %s484_s0 = inlined_call_operand.vmem [shape: f32[16,128], index: 0, kind: input, shape index: {}]   ;;  %s485_s1 = inlined_call_operand.vmem [shape: f32[16,128], index: 1, kind: input, shape index: {}]   ;;  %s486_s2 = inlined_call_operand.vmem [shape: f32[16,1], index: 2, kind: output, shape index: {0}]   ;;  %s487_s3 = inlined_call_operand.vmem [shape: f32[16,1], index: 3, kind: output, shape index: {1}]  }
   0x1   :  { %s445_s14 = smov 0  }
   0x2 LB: > { %s26_s15 = sadd.s32 1, %s414_s13  ;;  %p364_p0 = scmp.ge.s32.totalorder %s418_s14, 1  ;;  %s418_s14 = sphi %s445_s14, %s14_s14   ;;  %s414_s13 = sphi %s443_s13, %s489_s13   ;;  %s410_s12 = sphi %s441_s12, %s488_s12  }
   0x3   : > { %p28_p1 = scmp.ge.s32.totalorder %s26_s15, 2  ;;  %p170_p2 = scmp.lt.s32.totalorder %s418_s14, 3 }
   0x5   : > { %s491_s15 = smov (%p28_p1, %s26_s15), 0  ;;  %p171_p3 = pnand %p364_p0, %p170_p2 }
   0x6   : > { %p206_p4 = scmp.lt.s32.totalorder (!%p171_p3), %s410_s12, 1  ;;  %vm232_vm0 = vcmask (!%p171_p3), 7168   ;;  %v420_v3 = vmov (!%p171_p3), 0.0  }
   0x7   : > { %174 = sbr.rel (%p171_p3) target bundleno = 170 (0xaa), region = 28 }
   0xe   : > { %s493_s12 = smov (!%p206_p4, %s410_s12), 1 }
   0xf   : > { %s365_s16 = sshll.u32 %s493_s12, 3 }
  0x10   : > { %s212_s19 = scalar_lea.vmem %s484_s0, %s365_s16  ;;  %s219_s22 = scalar_lea.vmem %s485_s1, %s365_s16 }
  0x11   : > { %v235_v0 = vld [vmem:[%s212_s19] sm:$0xff]  ;;  %s223_s25 = scalar_lea.vmem %s486_s2, %s365_s16  ;;  %s227_s28 = scalar_lea.vmem %s487_s3, %s365_s16 }
  0x12   : > { %v236_v1 = vld [vmem:[%s219_s22] sm:$0xff]  ;;  %233 = vst.msk [vmem:[%s223_s25] sm:$0xff] %vm232_vm0, %v420_v3  ;;  %234 = vst.msk [vmem:[%s227_s28] sm:$0xff] %vm232_vm0, %v420_v3 }
  0x13   : > { %v237_v2 = vmul.f32 %v236_v1, %v235_v0  ;;  %v238_v4 = vadd.f32 %v236_v1, %v235_v0 }
  0x15   : > { %240 = vadd.xlane.f32.xlu0 %v237_v2 }
  0x19   : > { %246 = vadd.xlane.f32.xlu0 %v238_v4  ;;  %v239_v5 = vld [vmem:[%s223_s25] sm:$0xff] }
  0x1a   : > { %v245_v8 = vld [vmem:[%s227_s28] sm:$0xff] }
  0xa2   : > { %v241_v6 = vpop.xlane.xlu0 %240 }
  0xa3   : > { %v242_v7 = vadd.f32 %v241_v6, %v239_v5 }
  0xa5   : > { %244 = vst.msk [vmem:[%s223_s25] sm:$0xff] %vm232_vm0, %v242_v7 }
  0xa6   : > { %v247_v9 = vpop.xlane.xlu0 %246 }
  0xa7   : > { %v248_v10 = vadd.f32 %v247_v9, %v245_v8 }
  0xa9   : > { %249 = vst.msk [vmem:[%s227_s28] sm:$0xff] %vm232_vm0, %v248_v10 }
  0xaa PF: > { %s14_s14 = sadd.s32 1, %s418_s14   ;;  %s488_s12 = smov %s414_s13 }
  0xab   : > { %p11_p5 = scmp.ge.s32.totalorder %s14_s14, 4   ;;  %s489_s13 = smov %s491_s15 }
  0xad   :  { %13 = sbr.rel (!%p11_p5) target bundleno = 2 (0x2), region = 77 }

</bundles_post_ra>
